<compile_context>
chip_gen: v7x
topology: tpu7x:2x2x1
jax: 0.10.0
libtpu: 0.0.40
codegen_flags: <defaults>
</compile_context>

<pallas_src>
import functools

import jax
import jax.numpy as jnp
from jax.experimental import pallas as pl
from jax.experimental.pallas import tpu as pltpu


def encoder_kernel(p_ref,                 # SMEM (4*H+1,) packed conv params
                   x_ref, wL_ref, bL_ref,  # VMEM tiles
                   o_ref,                  # output (B, E)
                   acc_ref,                # VMEM f32 accumulator (B, E)
                   *, n_hidden):
    k = pl.program_id(0)

    @pl.when(k == 0)
    def _init():
        acc_ref[...] = jnp.zeros_like(acc_ref)

    # x tile is (B, 2, tk): gene axis on lanes -> fully lane-dense loads.
    x0 = x_ref[:, 0, :].astype(jnp.float32)          # (B, tk)
    x1 = x_ref[:, 1, :].astype(jnp.float32)          # (B, tk)

    # Packed scalar layout: w1[o,c] at 2*o+c, b1[o] at 2H+o, w2[o] at 3H+o,
    # b2 at 4H.  conv2(relu(conv1(x))) with k=1 is per-position channel mixing
    # -> unrolled VPU elementwise ops driven by SMEM scalars.
    acc2 = jnp.full(x0.shape, p_ref[4 * n_hidden], dtype=jnp.float32)   # + b2
    for o in range(n_hidden):
        h1 = jnp.maximum(
            x0 * p_ref[2 * o] + x1 * p_ref[2 * o + 1] + p_ref[2 * n_hidden + o],
            0.0)
        acc2 = acc2 + p_ref[3 * n_hidden + o] * h1
    h2 = jnp.maximum(acc2, 0.0)                      # (B, tk) == relu(conv2 out)

    # linear1 partial product over this gene tile (MXU): (B, tk) @ (tk, E)
    acc_ref[...] += jnp.dot(h2.astype(wL_ref.dtype), wL_ref[...],
                            preferred_element_type=jnp.float32)

    @pl.when(k == pl.num_programs(0) - 1)
    def _finalize():
        o_ref[...] = (acc_ref[...] + bL_ref[...]).astype(o_ref.dtype)


def _pick_tile(L, cap):
    """Largest multiple of 128 that divides L, capped; else the full extent."""
    t = min(cap, L)
    t -= t % 128
    while t >= 128:
        if L % t == 0:
            return t
        t -= 128
    return L


def _vmem_budget_bytes(B, tk, E, wl_itemsize):
    wl = 2 * tk * E * wl_itemsize          # double-buffered wL tiles
    xb = 2 * B * 2 * tk * 4                # double-buffered x tiles
    acc = B * E * 4                        # accumulator scratch
    out = 2 * B * E * 4                    # output buffering
    bl = 2 * E * 4
    total = wl + xb + acc + out + bl + (4 << 20)      # +4 MiB headroom
    # Clamp: at least the default-ish 16 MiB, at most 64 MiB (safe on v7x).
    return int(min(max(total, 16 << 20), 64 << 20))


def prepare_encoder_params(params, weight_dtype=jnp.float32):
    """One-time parameter prep (hoisted out of the per-call path).

    params: (w1 (H,2), b1 (H,), w2 (1,H), b2 (1,), wL (E,L), bL (E,))
    Returns packed conv scalars, pre-transposed (L,E) linear weight, (1,E) bias.
    """
    w1, b1, w2, b2, wL, bL = params
    n_hidden = w1.shape[0]
    conv_packed = jnp.concatenate(
        [w1.reshape(-1), b1.reshape(-1), w2.reshape(-1), b2.reshape(-1)]
    ).astype(jnp.float32)                               # (4*H + 1,)
    wL_t = wL.T.astype(weight_dtype)                    # (L, E), transposed once
    bL_2d = bL.reshape(1, -1).astype(jnp.float32)       # (1, E)
    return conv_packed, wL_t, bL_2d, n_hidden


def encoder_forward(x_ncl, prepared, *, tk_cap=2048):
    """x_ncl: (B, 2, n_gene) float32, exactly like the PyTorch NCL input."""
    conv_packed, wL_t, bL_2d, n_hidden = prepared
    B, C, L = x_ncl.shape
    assert C == 2
    E = wL_t.shape[1]

    tk = _pick_tile(L, tk_cap)
    # TODO(synk): pad the gene axis (and zero-pad wL_t rows) for n_gene values
    # with no 128-multiple divisor instead of requiring divisibility.
    assert L % tk == 0, "n_gene must be a multiple of the chosen gene tile"

    grid = (L // tk,)
    smem_spec = pl.BlockSpec(memory_space=pltpu.MemorySpace.SMEM)
    kernel = functools.partial(encoder_kernel, n_hidden=n_hidden)

    out = pl.pallas_call(
        kernel,
        out_shape=jax.ShapeDtypeStruct((B, E), jnp.float32),
        grid=grid,
        in_specs=[
            smem_spec,                                          # packed conv params
            pl.BlockSpec((B, 2, tk), lambda k: (0, 0, k)),      # x  (B, 2, L), lane-dense
            pl.BlockSpec((tk, E), lambda k: (k, 0)),            # wL (L, E)
            pl.BlockSpec((1, E), lambda k: (0, 0)),             # bL (1, E)
        ],
        out_specs=pl.BlockSpec((B, E), lambda k: (0, 0)),
        scratch_shapes=[pltpu.VMEM((B, E), jnp.float32)],
        compiler_params=pltpu.CompilerParams(
            dimension_semantics=("arbitrary",),
            vmem_limit_bytes=_vmem_budget_bytes(B, tk, E, wL_t.dtype.itemsize),
        ),
    )(conv_packed, x_ncl, wL_t, bL_2d)

    # PyTorch output shape is (B, 1, encode_dim) (conv2 leaves a channel dim of 1).
    return out.reshape(B, 1, E)


def encoder_reference(x_ncl, params):
    """Pure-JAX reference reproducing the PyTorch forward exactly."""
    w1, b1, w2, b2, wL, bL = params
    h = jnp.einsum('oc,bcl->bol', w1, x_ncl) + b1[None, :, None]   # conv1 (k=1)
    h = jnp.maximum(h, 0.0)
    h = jnp.einsum('oc,bcl->bol', w2, h) + b2[None, :, None]       # conv2 (k=1)
    h = jnp.maximum(h, 0.0)                                        # (B, 1, L)
    return h @ wL.T + bL                                           # (B, 1, E)


if __name__ == "__main__":
    # Small shapes consistent with the module (n_gene / encode_dim scaled down).
    B, n_gene, encode_dim = 2, 2048, 128

    key = jax.random.PRNGKey(0)
    kx, k1, k2, k3, k4, k5, k6 = jax.random.split(key, 7)

    x = jax.random.normal(kx, (B, 2, n_gene), jnp.float32)          # NCL input

    # Deterministic synthetic parameters (PyTorch shapes, kernel dim squeezed).
    w1 = jax.random.normal(k1, (10, 2), jnp.float32) * 0.5          # conv1.weight
    b1 = jax.random.normal(k2, (10,), jnp.float32) * 0.1            # conv1.bias
    w2 = jax.random.normal(k3, (1, 10), jnp.float32) * 0.5          # conv2.weight
    b2 = jax.random.normal(k4, (1,), jnp.float32) * 0.1             # conv2.bias
    wL = jax.random.normal(k5, (encode_dim, n_gene), jnp.float32) * 0.05  # linear1.weight
    bL = jax.random.normal(k6, (encode_dim,), jnp.float32) * 0.1          # linear1.bias
    params = (w1, b1, w2, b2, wL, bL)

    # One-time prep (wL transpose + param packing hoisted out of the call path).
    prepared = prepare_encoder_params(params, weight_dtype=jnp.float32)

    # tk_cap=512 -> 4 accumulation steps over the gene axis at n_gene=2048.
    y = encoder_forward(x, prepared, tk_cap=512)
    y = jax.block_until_ready(y)

    y_ref = encoder_reference(x, params)
    assert y.shape == (B, 1, encode_dim)
    max_err = jnp.max(jnp.abs(y - y_ref))
    assert jnp.allclose(y, y_ref, atol=2e-3, rtol=2e-3), f"max abs err = {max_err}"

    print("KERNEL_OK")
</pallas_src>

<mosaic_0001>
module attributes {stable_mosaic.version = 11 : i64} {
  func.func @encoder_kernel(%arg0: i32, %arg1: memref<41xf32, #tpu.memory_space<smem>>, %arg2: memref<2x2x512xf32, #tpu.memory_space<vmem>>, %arg3: memref<512x128xf32, #tpu.memory_space<vmem>>, %arg4: memref<1x128xf32, #tpu.memory_space<vmem>>, %arg5: memref<2x128xf32, #tpu.memory_space<vmem>>, %arg6: memref<2x128xf32, #tpu.memory_space<vmem>>) attributes {dimension_semantics = [#tpu.dimension_semantics<arbitrary>], iteration_bounds = array<i64: 4>, scalar_prefetch = 0 : i64, scratch_operands = 1 : i64, tpu.core_type = #tpu.core_type<tc>, window_params = [{transform_indices = @transform_0, window_bounds = array<i64: 41>}, {transform_indices = @transform_1, window_bounds = array<i64: 2, 2, 512>}, {transform_indices = @transform_2, window_bounds = array<i64: 512, 128>}, {pipeline_mode = #tpu.pipeline_mode<synchronous>, transform_indices = @transform_3, window_bounds = array<i64: 1, 128>}, {pipeline_mode = #tpu.pipeline_mode<synchronous>, transform_indices = @transform_4, window_bounds = array<i64: 2, 128>}]} {
    %c0_i32 = arith.constant 0 : i32
    %0 = arith.cmpi eq, %arg0, %c0_i32 : i32
    %1 = arith.extui %0 : i1 to i32
    %c0_i32_0 = arith.constant 0 : i32
    %2 = arith.cmpi ne, %1, %c0_i32_0 : i32
    scf.if %2 {
      %cst_25 = arith.constant 0.000000e+00 : f32
      %179 = vector.broadcast %cst_25 : f32 to vector<2x128xf32>
      %c0_26 = arith.constant 0 : index
      %c0_27 = arith.constant 0 : index
      %180 = vector.load %arg6[%c0_26, %c0_27] : memref<2x128xf32, #tpu.memory_space<vmem>>, vector<2x128xf32>
      tpu.vector_store %arg6[%c0_26, %c0_27], %179 {strides = array<i32>} : memref<2x128xf32, #tpu.memory_space<vmem>>, vector<2x128xf32>,
    } else {
    }
    %c0 = arith.constant 0 : index
    %c0_1 = arith.constant 0 : index
    %c0_2 = arith.constant 0 : index
    %3 = vector.load %arg2[%c0, %c0_1, %c0_2] : memref<2x2x512xf32, #tpu.memory_space<vmem>>, vector<2x1x512xf32>
    %4 = vector.shape_cast %3 : vector<2x1x512xf32> to vector<2x512xf32>
    %c0_3 = arith.constant 0 : index
    %c1 = arith.constant 1 : index
    %c0_4 = arith.constant 0 : index
    %5 = vector.load %arg2[%c0_3, %c1, %c0_4] : memref<2x2x512xf32, #tpu.memory_space<vmem>>, vector<2x1x512xf32>
    %6 = vector.shape_cast %5 : vector<2x1x512xf32> to vector<2x512xf32>
    %c40 = arith.constant 40 : index
    %7 = memref.load %arg1[%c40] : memref<41xf32, #tpu.memory_space<smem>>
    %8 = vector.broadcast %7 : f32 to vector<2x512xf32>
    %c0_5 = arith.constant 0 : index
    %9 = memref.load %arg1[%c0_5] : memref<41xf32, #tpu.memory_space<smem>>
    %10 = vector.broadcast %9 : f32 to vector<2x512xf32>
    %11 = arith.mulf %4, %10 : vector<2x512xf32>
    %c1_6 = arith.constant 1 : index
    %12 = memref.load %arg1[%c1_6] : memref<41xf32, #tpu.memory_space<smem>>
    %13 = vector.broadcast %12 : f32 to vector<2x512xf32>
    %14 = arith.mulf %6, %13 : vector<2x512xf32>
    %15 = arith.addf %11, %14 : vector<2x512xf32>
    %c20 = arith.constant 20 : index
    %16 = memref.load %arg1[%c20] : memref<41xf32, #tpu.memory_space<smem>>
    %17 = vector.broadcast %16 : f32 to vector<2x512xf32>
    %18 = arith.addf %15, %17 : vector<2x512xf32>
    %cst = arith.constant 0.000000e+00 : f32
    %19 = vector.broadcast %cst : f32 to vector<2x512xf32>
    %20 = arith.maximumf %18, %19 : vector<2x512xf32>
    %c30 = arith.constant 30 : index
    %21 = memref.load %arg1[%c30] : memref<41xf32, #tpu.memory_space<smem>>
    %22 = vector.broadcast %21 : f32 to vector<2x512xf32>
    %23 = arith.mulf %22, %20 : vector<2x512xf32>
    %24 = arith.addf %8, %23 : vector<2x512xf32>
    %c2 = arith.constant 2 : index
    %25 = memref.load %arg1[%c2] : memref<41xf32, #tpu.memory_space<smem>>
    %26 = vector.broadcast %25 : f32 to vector<2x512xf32>
    %27 = arith.mulf %4, %26 : vector<2x512xf32>
    %c3 = arith.constant 3 : index
    %28 = memref.load %arg1[%c3] : memref<41xf32, #tpu.memory_space<smem>>
    %29 = vector.broadcast %28 : f32 to vector<2x512xf32>
    %30 = arith.mulf %6, %29 : vector<2x512xf32>
    %31 = arith.addf %27, %30 : vector<2x512xf32>
    %c21 = arith.constant 21 : index
    %32 = memref.load %arg1[%c21] : memref<41xf32, #tpu.memory_space<smem>>
    %33 = vector.broadcast %32 : f32 to vector<2x512xf32>
    %34 = arith.addf %31, %33 : vector<2x512xf32>
    %cst_7 = arith.constant 0.000000e+00 : f32
    %35 = vector.broadcast %cst_7 : f32 to vector<2x512xf32>
    %36 = arith.maximumf %34, %35 : vector<2x512xf32>
    %c31 = arith.constant 31 : index
    %37 = memref.load %arg1[%c31] : memref<41xf32, #tpu.memory_space<smem>>
    %38 = vector.broadcast %37 : f32 to vector<2x512xf32>
    %39 = arith.mulf %38, %36 : vector<2x512xf32>
    %40 = arith.addf %24, %39 : vector<2x512xf32>
    %c4 = arith.constant 4 : index
    %41 = memref.load %arg1[%c4] : memref<41xf32, #tpu.memory_space<smem>>
    %42 = vector.broadcast %41 : f32 to vector<2x512xf32>
    %43 = arith.mulf %4, %42 : vector<2x512xf32>
    %c5 = arith.constant 5 : index
    %44 = memref.load %arg1[%c5] : memref<41xf32, #tpu.memory_space<smem>>
    %45 = vector.broadcast %44 : f32 to vector<2x512xf32>
    %46 = arith.mulf %6, %45 : vector<2x512xf32>
    %47 = arith.addf %43, %46 : vector<2x512xf32>
    %c22 = arith.constant 22 : index
    %48 = memref.load %arg1[%c22] : memref<41xf32, #tpu.memory_space<smem>>
    %49 = vector.broadcast %48 : f32 to vector<2x512xf32>
    %50 = arith.addf %47, %49 : vector<2x512xf32>
    %cst_8 = arith.constant 0.000000e+00 : f32
    %51 = vector.broadcast %cst_8 : f32 to vector<2x512xf32>
    %52 = arith.maximumf %50, %51 : vector<2x512xf32>
    %c32 = arith.constant 32 : index
    %53 = memref.load %arg1[%c32] : memref<41xf32, #tpu.memory_space<smem>>
    %54 = vector.broadcast %53 : f32 to vector<2x512xf32>
    %55 = arith.mulf %54, %52 : vector<2x512xf32>
    %56 = arith.addf %40, %55 : vector<2x512xf32>
    %c6 = arith.constant 6 : index
    %57 = memref.load %arg1[%c6] : memref<41xf32, #tpu.memory_space<smem>>
    %58 = vector.broadcast %57 : f32 to vector<2x512xf32>
    %59 = arith.mulf %4, %58 : vector<2x512xf32>
    %c7 = arith.constant 7 : index
    %60 = memref.load %arg1[%c7] : memref<41xf32, #tpu.memory_space<smem>>
    %61 = vector.broadcast %60 : f32 to vector<2x512xf32>
    %62 = arith.mulf %6, %61 : vector<2x512xf32>
    %63 = arith.addf %59, %62 : vector<2x512xf32>
    %c23 = arith.constant 23 : index
    %64 = memref.load %arg1[%c23] : memref<41xf32, #tpu.memory_space<smem>>
    %65 = vector.broadcast %64 : f32 to vector<2x512xf32>
    %66 = arith.addf %63, %65 : vector<2x512xf32>
    %cst_9 = arith.constant 0.000000e+00 : f32
    %67 = vector.broadcast %cst_9 : f32 to vector<2x512xf32>
    %68 = arith.maximumf %66, %67 : vector<2x512xf32>
    %c33 = arith.constant 33 : index
    %69 = memref.load %arg1[%c33] : memref<41xf32, #tpu.memory_space<smem>>
    %70 = vector.broadcast %69 : f32 to vector<2x512xf32>
    %71 = arith.mulf %70, %68 : vector<2x512xf32>
    %72 = arith.addf %56, %71 : vector<2x512xf32>
    %c8 = arith.constant 8 : index
    %73 = memref.load %arg1[%c8] : memref<41xf32, #tpu.memory_space<smem>>
    %74 = vector.broadcast %73 : f32 to vector<2x512xf32>
    %75 = arith.mulf %4, %74 : vector<2x512xf32>
    %c9 = arith.constant 9 : index
    %76 = memref.load %arg1[%c9] : memref<41xf32, #tpu.memory_space<smem>>
    %77 = vector.broadcast %76 : f32 to vector<2x512xf32>
    %78 = arith.mulf %6, %77 : vector<2x512xf32>
    %79 = arith.addf %75, %78 : vector<2x512xf32>
    %c24 = arith.constant 24 : index
    %80 = memref.load %arg1[%c24] : memref<41xf32, #tpu.memory_space<smem>>
    %81 = vector.broadcast %80 : f32 to vector<2x512xf32>
    %82 = arith.addf %79, %81 : vector<2x512xf32>
    %cst_10 = arith.constant 0.000000e+00 : f32
    %83 = vector.broadcast %cst_10 : f32 to vector<2x512xf32>
    %84 = arith.maximumf %82, %83 : vector<2x512xf32>
    %c34 = arith.constant 34 : index
    %85 = memref.load %arg1[%c34] : memref<41xf32, #tpu.memory_space<smem>>
    %86 = vector.broadcast %85 : f32 to vector<2x512xf32>
    %87 = arith.mulf %86, %84 : vector<2x512xf32>
    %88 = arith.addf %72, %87 : vector<2x512xf32>
    %c10 = arith.constant 10 : index
    %89 = memref.load %arg1[%c10] : memref<41xf32, #tpu.memory_space<smem>>
    %90 = vector.broadcast %89 : f32 to vector<2x512xf32>
    %91 = arith.mulf %4, %90 : vector<2x512xf32>
    %c11 = arith.constant 11 : index
    %92 = memref.load %arg1[%c11] : memref<41xf32, #tpu.memory_space<smem>>
    %93 = vector.broadcast %92 : f32 to vector<2x512xf32>
    %94 = arith.mulf %6, %93 : vector<2x512xf32>
    %95 = arith.addf %91, %94 : vector<2x512xf32>
    %c25 = arith.constant 25 : index
    %96 = memref.load %arg1[%c25] : memref<41xf32, #tpu.memory_space<smem>>
    %97 = vector.broadcast %96 : f32 to vector<2x512xf32>
    %98 = arith.addf %95, %97 : vector<2x512xf32>
    %cst_11 = arith.constant 0.000000e+00 : f32
    %99 = vector.broadcast %cst_11 : f32 to vector<2x512xf32>
    %100 = arith.maximumf %98, %99 : vector<2x512xf32>
    %c35 = arith.constant 35 : index
    %101 = memref.load %arg1[%c35] : memref<41xf32, #tpu.memory_space<smem>>
    %102 = vector.broadcast %101 : f32 to vector<2x512xf32>
    %103 = arith.mulf %102, %100 : vector<2x512xf32>
    %104 = arith.addf %88, %103 : vector<2x512xf32>
    %c12 = arith.constant 12 : index
    %105 = memref.load %arg1[%c12] : memref<41xf32, #tpu.memory_space<smem>>
    %106 = vector.broadcast %105 : f32 to vector<2x512xf32>
    %107 = arith.mulf %4, %106 : vector<2x512xf32>
    %c13 = arith.constant 13 : index
    %108 = memref.load %arg1[%c13] : memref<41xf32, #tpu.memory_space<smem>>
    %109 = vector.broadcast %108 : f32 to vector<2x512xf32>
    %110 = arith.mulf %6, %109 : vector<2x512xf32>
    %111 = arith.addf %107, %110 : vector<2x512xf32>
    %c26 = arith.constant 26 : index
    %112 = memref.load %arg1[%c26] : memref<41xf32, #tpu.memory_space<smem>>
    %113 = vector.broadcast %112 : f32 to vector<2x512xf32>
    %114 = arith.addf %111, %113 : vector<2x512xf32>
    %cst_12 = arith.constant 0.000000e+00 : f32
    %115 = vector.broadcast %cst_12 : f32 to vector<2x512xf32>
    %116 = arith.maximumf %114, %115 : vector<2x512xf32>
    %c36 = arith.constant 36 : index
    %117 = memref.load %arg1[%c36] : memref<41xf32, #tpu.memory_space<smem>>
    %118 = vector.broadcast %117 : f32 to vector<2x512xf32>
    %119 = arith.mulf %118, %116 : vector<2x512xf32>
    %120 = arith.addf %104, %119 : vector<2x512xf32>
    %c14 = arith.constant 14 : index
    %121 = memref.load %arg1[%c14] : memref<41xf32, #tpu.memory_space<smem>>
    %122 = vector.broadcast %121 : f32 to vector<2x512xf32>
    %123 = arith.mulf %4, %122 : vector<2x512xf32>
    %c15 = arith.constant 15 : index
    %124 = memref.load %arg1[%c15] : memref<41xf32, #tpu.memory_space<smem>>
    %125 = vector.broadcast %124 : f32 to vector<2x512xf32>
    %126 = arith.mulf %6, %125 : vector<2x512xf32>
    %127 = arith.addf %123, %126 : vector<2x512xf32>
    %c27 = arith.constant 27 : index
    %128 = memref.load %arg1[%c27] : memref<41xf32, #tpu.memory_space<smem>>
    %129 = vector.broadcast %128 : f32 to vector<2x512xf32>
    %130 = arith.addf %127, %129 : vector<2x512xf32>
    %cst_13 = arith.constant 0.000000e+00 : f32
    %131 = vector.broadcast %cst_13 : f32 to vector<2x512xf32>
    %132 = arith.maximumf %130, %131 : vector<2x512xf32>
    %c37 = arith.constant 37 : index
    %133 = memref.load %arg1[%c37] : memref<41xf32, #tpu.memory_space<smem>>
    %134 = vector.broadcast %133 : f32 to vector<2x512xf32>
    %135 = arith.mulf %134, %132 : vector<2x512xf32>
    %136 = arith.addf %120, %135 : vector<2x512xf32>
    %c16 = arith.constant 16 : index
    %137 = memref.load %arg1[%c16] : memref<41xf32, #tpu.memory_space<smem>>
    %138 = vector.broadcast %137 : f32 to vector<2x512xf32>
    %139 = arith.mulf %4, %138 : vector<2x512xf32>
    %c17 = arith.constant 17 : index
    %140 = memref.load %arg1[%c17] : memref<41xf32, #tpu.memory_space<smem>>
    %141 = vector.broadcast %140 : f32 to vector<2x512xf32>
    %142 = arith.mulf %6, %141 : vector<2x512xf32>
    %143 = arith.addf %139, %142 : vector<2x512xf32>
    %c28 = arith.constant 28 : index
    %144 = memref.load %arg1[%c28] : memref<41xf32, #tpu.memory_space<smem>>
    %145 = vector.broadcast %144 : f32 to vector<2x512xf32>
    %146 = arith.addf %143, %145 : vector<2x512xf32>
    %cst_14 = arith.constant 0.000000e+00 : f32
    %147 = vector.broadcast %cst_14 : f32 to vector<2x512xf32>
    %148 = arith.maximumf %146, %147 : vector<2x512xf32>
    %c38 = arith.constant 38 : index
    %149 = memref.load %arg1[%c38] : memref<41xf32, #tpu.memory_space<smem>>
    %150 = vector.broadcast %149 : f32 to vector<2x512xf32>
    %151 = arith.mulf %150, %148 : vector<2x512xf32>
    %152 = arith.addf %136, %151 : vector<2x512xf32>
    %c18 = arith.constant 18 : index
    %153 = memref.load %arg1[%c18] : memref<41xf32, #tpu.memory_space<smem>>
    %154 = vector.broadcast %153 : f32 to vector<2x512xf32>
    %155 = arith.mulf %4, %154 : vector<2x512xf32>
    %c19 = arith.constant 19 : index
    %156 = memref.load %arg1[%c19] : memref<41xf32, #tpu.memory_space<smem>>
    %157 = vector.broadcast %156 : f32 to vector<2x512xf32>
    %158 = arith.mulf %6, %157 : vector<2x512xf32>
    %159 = arith.addf %155, %158 : vector<2x512xf32>
    %c29 = arith.constant 29 : index
    %160 = memref.load %arg1[%c29] : memref<41xf32, #tpu.memory_space<smem>>
    %161 = vector.broadcast %160 : f32 to vector<2x512xf32>
    %162 = arith.addf %159, %161 : vector<2x512xf32>
    %cst_15 = arith.constant 0.000000e+00 : f32
    %163 = vector.broadcast %cst_15 : f32 to vector<2x512xf32>
    %164 = arith.maximumf %162, %163 : vector<2x512xf32>
    %c39 = arith.constant 39 : index
    %165 = memref.load %arg1[%c39] : memref<41xf32, #tpu.memory_space<smem>>
    %166 = vector.broadcast %165 : f32 to vector<2x512xf32>
    %167 = arith.mulf %166, %164 : vector<2x512xf32>
    %168 = arith.addf %152, %167 : vector<2x512xf32>
    %cst_16 = arith.constant 0.000000e+00 : f32
    %169 = vector.broadcast %cst_16 : f32 to vector<2x512xf32>
    %170 = arith.maximumf %168, %169 : vector<2x512xf32>
    %c0_17 = arith.constant 0 : index
    %c0_18 = arith.constant 0 : index
    %171 = vector.load %arg6[%c0_17, %c0_18] : memref<2x128xf32, #tpu.memory_space<vmem>>, vector<2x128xf32>
    %c0_19 = arith.constant 0 : index
    %c0_20 = arith.constant 0 : index
    %172 = vector.load %arg3[%c0_19, %c0_20] : memref<512x128xf32, #tpu.memory_space<vmem>>, vector<512x128xf32>
    %cst_21 = arith.constant dense<0.000000e+00> : vector<2x128xf32>
    %173 = tpu.matmul %170, %172, %cst_21 {dimension_numbers = #tpu.dot_dimension_numbers<[1], [0], [0], [1], [0, 0, 1, 1], [], []>} : vector<2x512xf32>, vector<512x128xf32>, vector<2x128xf32> -> vector<2x128xf32>
    %174 = arith.addf %171, %173 : vector<2x128xf32>
    %c0_22 = arith.constant 0 : index
    %c0_23 = arith.constant 0 : index
    %175 = vector.load %arg6[%c0_22, %c0_23] : memref<2x128xf32, #tpu.memory_space<vmem>>, vector<2x128xf32>
    tpu.vector_store %arg6[%c0_22, %c0_23], %174 {strides = array<i32>} : memref<2x128xf32, #tpu.memory_space<vmem>>, vector<2x128xf32>,
    %c3_i32 = arith.constant 3 : i32
    %176 = arith.cmpi eq, %arg0, %c3_i32 : i32
    %177 = arith.extui %176 : i1 to i32
    %c0_i32_24 = arith.constant 0 : i32
    %178 = arith.cmpi ne, %177, %c0_i32_24 : i32
    scf.if %178 {
      %c0_25 = arith.constant 0 : index
      %c0_26 = arith.constant 0 : index
      %179 = vector.load %arg6[%c0_25, %c0_26] : memref<2x128xf32, #tpu.memory_space<vmem>>, vector<2x128xf32>
      %c0_27 = arith.constant 0 : index
      %c0_28 = arith.constant 0 : index
      %180 = vector.load %arg4[%c0_27, %c0_28] : memref<1x128xf32, #tpu.memory_space<vmem>>, vector<1x128xf32>
      %181 = vector.broadcast %180 : vector<1x128xf32> to vector<2x128xf32>
      %182 = arith.addf %179, %181 : vector<2x128xf32>
      %c0_29 = arith.constant 0 : index
      %c0_30 = arith.constant 0 : index
      %183 = vector.load %arg5[%c0_29, %c0_30] : memref<2x128xf32, #tpu.memory_space<vmem>>, vector<2x128xf32>
      tpu.vector_store %arg5[%c0_29, %c0_30], %182 {strides = array<i32>} : memref<2x128xf32, #tpu.memory_space<vmem>>, vector<2x128xf32>,
    } else {
    }
    return
  }
  func.func @transform_0(%arg0: i32) -> i32 {
    %c0_i32 = arith.constant 0 : i32
    %c0_i32_0 = arith.constant 0 : i32
    return %c0_i32 : i32
  }
  func.func @transform_1(%arg0: i32) -> (i32, i32, i32) {
    %c0_i32 = arith.constant 0 : i32
    %c0_i32_0 = arith.constant 0 : i32
    %c0_i32_1 = arith.constant 0 : i32
    return %c0_i32, %c0_i32_0, %arg0 : i32, i32, i32
  }
  func.func @transform_2(%arg0: i32) -> (i32, i32) {
    %c0_i32 = arith.constant 0 : i32
    %c0_i32_0 = arith.constant 0 : i32
    return %arg0, %c0_i32 : i32, i32
  }
  func.func @transform_3(%arg0: i32) -> (i32, i32) {
    %c0_i32 = arith.constant 0 : i32
    %c0_i32_0 = arith.constant 0 : i32
    %c0_i32_1 = arith.constant 0 : i32
    return %c0_i32, %c0_i32_0 : i32, i32
  }
  func.func @transform_4(%arg0: i32) -> (i32, i32) {
    %c0_i32 = arith.constant 0 : i32
    %c0_i32_0 = arith.constant 0 : i32
    %c0_i32_1 = arith.constant 0 : i32
    return %c0_i32, %c0_i32_0 : i32, i32
  }
}

</mosaic_0001>

<bundles_post_ra>
// kernel: tpu_custom_call.1
= control target key start
LH: loop header
LB: loop body
LE: loop exit
PB: predicated region body
PF: predicated region fallthrough
CT: control target
= control target key end

     0   :  { %9 = vsyncpa [#allocation6], 0  ;;  %s1825_s0 = inlined_call_operand.hbm [shape: f32[41], index: 0, kind: input, shape index: {}]   ;;  %s1826_s1 = inlined_call_operand.hbm [shape: f32[2,2,2048], index: 1, kind: input, shape index: {}]   ;;  %s1827_s2 = inlined_call_operand.hbm [shape: f32[2048,128], index: 2, kind: input, shape index: {}]   ;;  %s1828_s3 = inlined_call_operand.vmem [shape: f32[1,128], index: 3, kind: input, shape index: {}]   ;;  %s1829_s4 = inlined_call_operand.hbm [shape: f32[2,128], index: 4, kind: output, shape index: {}]  }
   0x1   :  { %10 = vsyncpa [#allocation4], 0 }
   0x2   :  { %12 = vsyncpa [#allocation4 + $0x1], 0 }
   0x3   :  { %13 = vsyncpa [#allocation9], 0 }
   0x4   :  { %15 = vsyncpa [#allocation9 + $0x1], 0 }
   0x5   :  { %16 = vsyncpa [#allocation5], 0  ;;  %s1286_s15 = smov 0   ;;  %s1288_s16 = smov 0  }
   0x6   :  { %s1290_s17 = smov 0   ;;  %s1292_s18 = smov 0  }
   0x7 LB: > { %s1305_s19 = sadd.s32 4294967295, %s1250_s18   ;;  %s1308_s20 = sadd.s32 1, %s1250_s18   ;;  %s1250_s18 = sphi %s1292_s18, %s1842_s18   ;;  %s1246_s17 = sphi %s1290_s17, %s1841_s17   ;;  %s1242_s16 = sphi %s1288_s16, %s1840_s16   ;;  %s1238_s15 = sphi %s1286_s15, %s1839_s15  }
   0x8   : > { %s47_s21 = ssub.s32 %s1250_s18, %s1308_s20  ;;  %s50_s22 = sadd.s32 1, %s1246_s17 }
   0x9   : > { %p48_p0 = scmp.eq.s32.totalorder %s47_s21, 0  ;;  %p57_p1 = scmp.ne.s32.totalorder %s1246_s17, %s1242_s16 }
   0xa   : > { %p58_p2 = scmp.eq.s32.totalorder %s1250_s18, 0  ;;  %p63_p3 = scmp.ne.s32.totalorder %s1242_s16, %s1238_s15 }
   0xb   : > { %s1318_s23 = scalar_select %p48_p0, %s1246_s17, %s50_s22  }
   0xc   : > { %p59_p4 = por %p58_p2, %p57_p1  ;;  %p1830_p5 = scmp.eq.s32.totalorder %s1305_s19, 0 }
   0xd   : > { %p839_p6 = scmp.ge.s32.totalorder %s1250_s18, 1  ;;  %p142_p7 = scmp.lt.s32.totalorder %s1250_s18, 5 }
   0xe   : > { %p1325_p8 = por %p1830_p5, %p63_p3  ;;  %p1062_p11 = scmp.lt.s32.totalorder %s1250_s18, 4 }
   0xf   : > { %p1330_p10 = pnand %p839_p6, %p142_p7  ;;  %s1338_s26 = sand.u32 1, %s1246_s17  }
  0x10   : > { %s1832_s24 = scalar_select %p1325_p8, 1, 0 }
  0x11   : > { %p1050_p12 = pneg %p1330_p10  ;;  %p1340_p13 = pnand %p1062_p11, %p59_p4 }
  0x12   : > { %s842_s28 = sshll.u32 %s1338_s26, 4  ;;  %s902_s29 = sshll.u32 %s1250_s18, 7 }
  0x13   : > { %p1051_p0 = pnand %p1050_p12, %p1830_p5  ;;  %s1105_s6 = scalar_lea.hbm %s1825_s0, 16 }
  0x14   : > { %p1106_p1 = scmp.ne.s32.totalorder %s1825_s0, %s1105_s6  ;;  %p1112_p4 = scmp.lt.u32.totalorder %s1105_s6, %s1825_s0 }
  0x15   : > { %p1107_p2 = pneg %p1051_p0 }
  0x17   : > { %p1108_p3 = pnand %p1107_p2, %p1106_p1 }
  0x19   : > { %p1109_p6 = pneg %p1108_p3 }
  0x1b   : > { %p1114_p7 = pnand %p1112_p4, %p1109_p6 }
  0x1d   : > { %1117 = shalt.err (!%p1114_p7)
}
  0x1e   : > { %s1252_s11 = smov [#allocation3]   ;;  %s1363_s21 = scalar_lea.hbm %s1826_s1, %s902_s29 }
  0x1f   : > { %1053 = dma.hbm_to_smem (!%p1051_p0), %s1825_s0, 16, %s1252_s11, [#allocation6]  }
  0x20   : > { %s171_s22 = scalar_lea.vmem [#allocation7], %s842_s28  ;;  %s168_s5 = scalar_lea.sflag [#allocation4], %s1338_s26 }
  0x21   : > { %s178_s30 = sshll.u32 %s171_s22, 4  ;;  %s1118_s6 = scalar_lea.hbm %s1363_s21, 256  ;;  %s1365_s30 = int_to_ptr.vmem [resolvable:$true] %s178_s30 }
  0x22   : > { %p1119_p11 = scmp.ne.s32.totalorder %s1363_s21, %s1118_s6  ;;  %p1120_p12 = pneg %p1340_p13 }
  0x23   : > { %s1123_s8 = scalar_lea.hbm %s1826_s1, 1024  ;;  %p1124_p2 = scmp.lt.u32.totalorder %s1363_s21, %s1826_s1 }
  0x24   : > { %p1121_p0 = pnand %p1120_p12, %p1119_p11  ;;  %p1125_p3 = scmp.lt.u32.totalorder %s1123_s8, %s1118_s6 }
  0x25   : > { %p1127_p4 = scmp.lt.u32.totalorder %s1118_s6, %s1363_s21 }
  0x26   : > { %p1122_p1 = pneg %p1121_p0  ;;  %p1126_p6 = por %p1125_p3, %p1124_p2 }
  0x28   : > { %p1128_p7 = por %p1127_p4, %p1126_p6 }
  0x2a   : > { %p1129_p9 = pnand %p1128_p7, %p1122_p1 }
  0x2c   : > { %1132 = shalt.err (!%p1129_p9)
}
  0x2d   : > { %s1133_s28 = scalar_lea.vmem %s1365_s30, 256  ;;  %s1253_s11 = smov [#allocation7]  }
  0x2e   : > { %p1134_p11 = scmp.ne.s32.totalorder %s1365_s30, %s1133_s28  ;;  %s1138_s12 = sshll.u32 %s1253_s11, 4  ;;  %s1139_s12 = int_to_ptr.vmem [resolvable:$false] %s1138_s12 }
  0x2f   : > { %s1140_s13 = scalar_lea.vmem %s1139_s12, 512  ;;  %p1141_p8 = scmp.lt.s32.totalorder %s1365_s30, %s1139_s12 }
  0x30   : > { %p1136_p0 = pnand %p1134_p11, %p1120_p12  ;;  %p1142_p2 = scmp.lt.s32.totalorder %s1140_s13, %s1133_s28 }
  0x32   : > { %p1137_p5 = pneg %p1136_p0  ;;  %p1143_p3 = por %p1142_p2, %p1141_p8 }
  0x34   : > { %p1144_p6 = pnand %p1143_p3, %p1137_p5 }
  0x36   : > { %1147 = shalt.err (!%p1144_p6)
}
  0x37   : > { %s1254_s14 = smov 512   ;;  %s1255_s15 = smov 128  }
  0x38   : > { %s1256_s22 = smov 8   ;;  %s845_s6 = sshll.u32 %s1338_s26, 9 }
  0x39   : > { %1057 = dma.hbm_to_vmem [thread:$0]  (!%p1340_p13), %s1363_s21, 256, %s1365_s30, %s168_s5, %s1254_s14, %s1255_s15, %s1256_s22  }
  0x3a   : > { %s903_s7 = sshll.u32 %s1250_s18, 13  ;;  %s192_s10 = scalar_lea.vmem [#allocation8], %s845_s6 }
  0x3b   : > { %s1402_s9 = scalar_lea.hbm %s1827_s2, %s903_s7  ;;  %s199_s28 = sshll.u32 %s192_s10, 4  ;;  %s1404_s28 = int_to_ptr.vmem [resolvable:$true] %s199_s28 }
  0x3c   : > { %s189_s11 = scalar_lea.sflag [#allocation9], %s1338_s26  ;;  %s1148_s12 = scalar_lea.hbm %s1402_s9, 8192 }
  0x3d   : > { %p1149_p5 = scmp.ne.s32.totalorder %s1402_s9, %s1148_s12  ;;  %s1153_s30 = scalar_lea.hbm %s1827_s2, 32768 }
  0x3e   : > { %p1154_p1 = scmp.lt.u32.totalorder %s1402_s9, %s1827_s2  ;;  %p1155_p4 = scmp.lt.u32.totalorder %s1153_s30, %s1148_s12 }
  0x3f   : > { %p1151_p8 = pnand %p1149_p5, %p1120_p12  ;;  %p1157_p11 = scmp.lt.u32.totalorder %s1148_s12, %s1402_s9 }
  0x40   : > { %p1156_p7 = por %p1155_p4, %p1154_p1 }
  0x41   : > { %p1152_p9 = pneg %p1151_p8 }
  0x42   : > { %p1158_p0 = por %p1157_p11, %p1156_p7 }
  0x44   : > { %p1159_p2 = pnand %p1158_p0, %p1152_p9 }
  0x46   : > { %1162 = shalt.err (!%p1159_p2)
}
  0x47   : > { %s1163_s14 = scalar_lea.vmem %s1404_s28, 8192  ;;  %s1257_s6 = smov [#allocation8]  }
  0x48   : > { %p1164_p3 = scmp.ne.s32.totalorder %s1404_s28, %s1163_s14  ;;  %s1168_s7 = sshll.u32 %s1257_s6, 4  ;;  %s1169_s7 = int_to_ptr.vmem [resolvable:$false] %s1168_s7 }
  0x49   : > { %s1170_s29 = scalar_lea.vmem %s1169_s7, 16384  ;;  %p1171_p8 = scmp.lt.s32.totalorder %s1404_s28, %s1169_s7 }
  0x4a   : > { %p1166_p6 = pnand %p1164_p3, %p1120_p12  ;;  %p1172_p1 = scmp.lt.s32.totalorder %s1170_s29, %s1163_s14 }
  0x4c   : > { %p1167_p5 = pneg %p1166_p6  ;;  %p1173_p4 = por %p1172_p1, %p1171_p8 }
  0x4e   : > { %p1174_p7 = pnand %p1173_p4, %p1167_p5 }
  0x50   : > { %1177 = shalt.err (!%p1174_p7)
}
  0x51   : > { %1060 = dma.hbm_to_vmem [thread:$0]  (!%p1340_p13), %s1402_s9, 8192, %s1404_s28, %s189_s11, %s1255_s15, %s1255_s15, %s1256_s22  }
  0x52   : > { %211 = sbr.rel (%p1330_p10) target bundleno = 445 (0x1bd), region = 36  ;;  %p1835_p12 = scmp.eq.s32.totalorder (!%p1330_p10), %s1305_s19, 0 }
  0x59   : > { %1221 = dma.done.wait (%p1835_p12), [#allocation6], 16   ;;  %p1836_p9 = pmov %p1835_p12 }
  0x5a   : > { %s217_s27 = sand.u32 1, %s1242_s16   ;;  %p1837_p11 = scmp.ne.s32.totalorder %s1832_s24, 0 }
  0x5b   : > { %1223 = vsyncadd (%p1836_p9), [#allocation6], 4294967280  ;;  %s850_s8 = sshll.u32 %s217_s27, 4  ;;  %s218_s10 = scalar_lea.sflag [#allocation4], %s217_s27 }
  0x5c   : > { %s1442_s12 = scalar_lea.vmem [#allocation7], %s850_s8 }
  0x5d   : > { %1225 = dma.done.wait (%p1837_p11), %s218_s10, 256  }
  0x5e   : > { %1227 = vsyncadd (%p1837_p11), %s218_s10, 4294967040  ;;  %s851_s25 = sshll.u32 %s217_s27, 9  ;;  %s227_s26 = scalar_lea.sflag [#allocation9], %s217_s27 }
  0x5f   : > { %s1448_s15 = scalar_lea.vmem [#allocation8], %s851_s25 }
  0x60   : > { %1229 = dma.done.wait (%p1837_p11), %s227_s26, 8192  }
  0x61   : > { %1231 = vsyncadd (%p1837_p11), %s227_s26, 4294959104 }
  0x62   : > { %235 = sfence }
  0x63   : > { %p1838_p10 = scmp.ne.s32.totalorder %s1305_s19, 0 }
  0x64   : > { %v1258_v0 = vmov (!%p1838_p10), 0.0  }
  0x65   : > { %261 = sbr.rel (%p1838_p10) target bundleno = 108 (0x6c), region = 52  ;;  %262 = vst [vmem:[#allocation2] sm:$0x3] (!%p1838_p10), %v1258_v0 }
  0x6c PF: > { %v511_v1 = vld [vmem:[%s1448_s15 + $0x80] sm:$0xff]  ;;  %v512_v2 = vld [vmem:[%s1448_s15 + $0x88] sm:$0xff]  ;;  %s1459_s24 = sld [smem:[#allocation3 + $0x28]]  ;;  %v513_v12 = vld [vmem:[%s1448_s15 + $0x90] sm:$0xff]  ;;  %s1469_s9 = sld [smem:[#allocation3 + $0x1]] }
  0x6d   : > { %v495_v3 = vld [vmem:[%s1448_s15] sm:$0xff]  ;;  %v974_v4 = vpack.c.bf16 %v512_v2, %v511_v1  ;;  %v496_v5 = vld [vmem:[%s1448_s15 + $0x8] sm:$0xff]  ;;  %s1464_s22 = sld [smem:[#allocation3]]  ;;  %v514_v14 = vld [vmem:[%s1448_s15 + $0x98] sm:$0xff]  ;;  %s1474_s28 = sld [smem:[#allocation3 + $0x14]] }
  0x6e   : > { %v543_v6 = vld [vmem:[%s1448_s15 + $0x180] sm:$0xff]  ;;  %v544_v7 = vld [vmem:[%s1448_s15 + $0x188] sm:$0xff]  ;;  %v976_v8 = vpack.c.bf16 %v496_v5, %v495_v3  ;;  %v497_v15 = vld [vmem:[%s1448_s15 + $0x10] sm:$0xff]  ;;  %v978_v17 = vpack.c.bf16 %v514_v14, %v513_v12  ;;  %s1479_s11 = sld [smem:[#allocation3 + $0x1e]]  ;;  %s1484_s18 = sld [smem:[#allocation3 + $0x2]] }
  0x6f   : > { %v1006_v9 = vpack.c.bf16 %v544_v7, %v543_v6  ;;  %v527_v10 = vld [vmem:[%s1448_s15 + $0x100] sm:$0xff]  ;;  %v528_v11 = vld [vmem:[%s1448_s15 + $0x108] sm:$0xff]  ;;  %975 = vmatprep.subr.bf16.mxu0 %v974_v4  ;;  %v498_v16 = vld [vmem:[%s1448_s15 + $0x18] sm:$0xff]  ;;  %s1489_s21 = sld [smem:[#allocation3 + $0x3]]  ;;  %s1495_s30 = sld [smem:[#allocation3 + $0x15]] }
  0x70   : > { %v1008_v13 = vpack.c.bf16 %v528_v11, %v527_v10  ;;  %977 = vmatpush3.bf16.msra.mxu0 %v976_v8  ;;  %v980_v18 = vpack.c.bf16 %v498_v16, %v497_v15  ;;  %v545_v19 = vld [vmem:[%s1448_s15 + $0x190] sm:$0xff]  ;;  %v546_v20 = vld [vmem:[%s1448_s15 + $0x198] sm:$0xff]  ;;  %v515_v24 = vld [vmem:[%s1448_s15 + $0xa0] sm:$0xff]  ;;  %s1501_s5 = sld [smem:[#allocation3 + $0x1f]]  ;;  %s1507_s13 = sld [smem:[#allocation3 + $0x4]] }
  0x71   : > { %1007 = vmatprep.subr.bf16.mxu1 %v1006_v9  ;;  %v529_v21 = vld [vmem:[%s1448_s15 + $0x110] sm:$0xff]  ;;  %v1010_v22 = vpack.c.bf16 %v546_v20, %v545_v19  ;;  %v530_v23 = vld [vmem:[%s1448_s15 + $0x118] sm:$0xff]  ;;  %v516_v25 = vld [vmem:[%s1448_s15 + $0xa8] sm:$0xff]  ;;  %979 = vmatprep.subr.bf16.mxu0 %v978_v17  ;;  %s1513_s14 = sld [smem:[#allocation3 + $0x5]]  ;;  %s1519_s6 = sld [smem:[#allocation3 + $0x16]] }
  0x72   : > { %1009 = vmatpush3.bf16.msra.mxu1 %v1008_v13  ;;  %v1012_v26 = vpack.c.bf16 %v530_v23, %v529_v21  ;;  %v982_v27 = vpack.c.bf16 %v516_v25, %v515_v24  ;;  %v499_v28 = vld [vmem:[%s1448_s15 + $0x20] sm:$0xff]  ;;  %v500_v29 = vld [vmem:[%s1448_s15 + $0x28] sm:$0xff]  ;;  %v271_v34 = vstv %s1459_s24  ;;  %v517_v37 = vld [vmem:[%s1448_s15 + $0xb0] sm:$0xff]  ;;  %s1525_s7 = sld [smem:[#allocation3 + $0x20]]  ;;  %s1531_s29 = sld [smem:[#allocation3 + $0x6]] }
  0x73   : > { %v547_v30 = vld [vmem:[%s1448_s15 + $0x1a0] sm:$0xff]  ;;  %1011 = vmatprep.subr.bf16.mxu1 %v1010_v22  ;;  %v548_v31 = vld [vmem:[%s1448_s15 + $0x1a8] sm:$0xff]  ;;  %v984_v35 = vpack.c.bf16 %v500_v29, %v499_v28  ;;  %v518_v38 = vld [vmem:[%s1448_s15 + $0xb8] sm:$0xff]  ;;  %v273_v40 = vstv %s1464_s22  ;;  %s1541_s27 = sld [smem:[#allocation3 + $0x7]]  ;;  %s1565_s10 = sld [smem:[#allocation3 + $0x21]] }
  0x74   : > { %v531_v32 = vld [vmem:[%s1448_s15 + $0x120] sm:$0xff]  ;;  %v532_v33 = vld [vmem:[%s1448_s15 + $0x128] sm:$0xff]  ;;  %981 = vmatpush3.bf16.msra.mxu0 %v980_v18  ;;  %v1014_v36 = vpack.c.bf16 %v548_v31, %v547_v30  ;;  %v501_v39 = vld [vmem:[%s1448_s15 + $0x30] sm:$0xff]  ;;  %v986_v42 = vpack.c.bf16 %v518_v38, %v517_v37  ;;  %v277_v46 = vstv %s1469_s9  ;;  %s1551_s8 = sld [smem:[#allocation3 + $0x17]]  ;;  %s1658_s25 = sld [smem:[#allocation3 + $0x9]] }
  0x75   : > { %983 = vmatprep.subr.bf16.mxu0 %v982_v27  ;;  %v1016_v41 = vpack.c.bf16 %v532_v33, %v531_v32  ;;  %v502_v43 = vld [vmem:[%s1448_s15 + $0x38] sm:$0xff]  ;;  %v549_v44 = vld [vmem:[%s1448_s15 + $0x1b0] sm:$0xff]  ;;  %v519_v50 = vld [vmem:[%s1448_s15 + $0xc0] sm:$0xff]  ;;  %v283_v51 = vstv %s1474_s28  ;;  %s1670_s26 = sld [smem:[#allocation3 + $0x18]]  ;;  %s1678_s22 = sld [smem:[#allocation3 + $0x22]] }
  0x76   : > { %1013 = vmatpush3.bf16.msra.mxu1 %v1012_v26  ;;  %v550_v45 = vld [vmem:[%s1448_s15 + $0x1b8] sm:$0xff]  ;;  %v533_v48 = vld [vmem:[%s1448_s15 + $0x130] sm:$0xff]  ;;  %v520_v52 = vld [vmem:[%s1448_s15 + $0xc8] sm:$0xff]  ;;  %v289_v55 = vstv %s1479_s11  ;;  %v988_v56 = vpack.c.bf16 %v502_v43, %v501_v39  ;;  %s1680_s9 = sld [smem:[#allocation3 + $0xb]]  ;;  %s1693_s28 = sld [smem:[#allocation3 + $0x19]] }
  0x77   : > { %1015 = vmatprep.subr.bf16.mxu1 %v1014_v36  ;;  %v1018_v47 = vpack.c.bf16 %v550_v45, %v549_v44  ;;  %v534_v49 = vld [vmem:[%s1448_s15 + $0x138] sm:$0xff]  ;;  %v503_v53 = vld [vmem:[%s1448_s15 + $0x40] sm:$0xff]  ;;  %v504_v54 = vld [vmem:[%s1448_s15 + $0x48] sm:$0xff]  ;;  %v295_v60 = vstv %s1484_s18  ;;  %v990_v62 = vpack.c.bf16 %v520_v52, %v519_v50  ;;  %s1702_s18 = sld [smem:[#allocation3 + $0xc]]  ;;  %s1704_s11 = sld [smem:[#allocation3 + $0xd]] }
  0x78   : > { %985 = vmatpush3.bf16.msra.mxu0 %v984_v35  ;;  %v551_v57 = vld [vmem:[%s1448_s15 + $0x1c0] sm:$0xff]  ;;  %v552_v58 = vld [vmem:[%s1448_s15 + $0x1c8] sm:$0xff]  ;;  %v1020_v61 = vpack.c.bf16 %v534_v49, %v533_v48  ;;  %v521_v0 = vld [vmem:[%s1448_s15 + $0xd0] sm:$0xff]  ;;  %v299_v2 = vstv %s1489_s21  ;;  %v992_v12 = vpack.c.bf16 %v504_v54, %v503_v53  ;;  %s1713_s21 = sld [smem:[#allocation3 + $0x1a]]  ;;  %s1717_s24 = sld [smem:[#allocation3 + $0x23]] }
  0x79   : > { %v535_v59 = vld [vmem:[%s1448_s15 + $0x140] sm:$0xff]  ;;  %987 = vmatprep.subr.bf16.mxu0 %v986_v42  ;;  %v536_v63 = vld [vmem:[%s1448_s15 + $0x148] sm:$0xff]  ;;  %v522_v1 = vld [vmem:[%s1448_s15 + $0xd8] sm:$0xff]  ;;  %v1022_v3 = vpack.c.bf16 %v552_v58, %v551_v57  ;;  %v305_v7 = vstv %s1495_s30  ;;  %s1720_s30 = sld [smem:[#allocation3 + $0xe]]  ;;  %p896_p13 = scmp.ne.s32.totalorder %s1305_s19, 3 }
  0x7a   : > { %1017 = vmatpush3.bf16.msra.mxu1 %v1016_v41  ;;  %v1534_v4 = vld [vmem:[%s1448_s15 + $0x50] sm:$0xff]  ;;  %v1537_v5 = vld [vmem:[%s1448_s15 + $0x58] sm:$0xff]  ;;  %v311_v11 = vstv %s1501_s5  ;;  %v523_v13 = vld [vmem:[%s1448_s15 + $0xe0] sm:$0xff]  ;;  %v1024_v17 = vpack.c.bf16 %v536_v63, %v535_v59  ;;  %v994_v18 = vpack.c.bf16 %v522_v1, %v521_v0  ;;  %s1727_s5 = sld [smem:[#allocation3 + $0x24]] }
  0x7b   : > { %1019 = vmatprep.subr.bf16.mxu1 %v1018_v47  ;;  %v553_v6 = vld [vmem:[%s1448_s15 + $0x1d0] sm:$0xff]  ;;  %v554_v8 = vld [vmem:[%s1448_s15 + $0x1d8] sm:$0xff]  ;;  %v524_v14 = vld [vmem:[%s1448_s15 + $0xe8] sm:$0xff]  ;;  %v317_v16 = vstv %s1507_s13  ;;  %v996_v23 = vpack.c.bf16 %v1537_v5, %v1534_v4  ;;  %s1729_s13 = sld [smem:[#allocation3 + $0xf]] }
  0x7c   : > { %v1545_v9 = vld [vmem:[%s1448_s15 + $0x150] sm:$0xff]  ;;  %v1548_v10 = vld [vmem:[%s1448_s15 + $0x158] sm:$0xff]  ;;  %989 = vmatpush3.bf16.msra.mxu0 %v988_v56  ;;  %v1556_v15 = vld [vmem:[%s1448_s15 + $0x60] sm:$0xff]  ;;  %v321_v22 = vstv %s1513_s14  ;;  %v1026_v24 = vpack.c.bf16 %v554_v8, %v553_v6  ;;  %v998_v30 = vpack.c.bf16 %v524_v14, %v523_v13  ;;  %s1735_s14 = sld [smem:[#allocation3 + $0x1b]] }
  0x7d   : > { %991 = vmatprep.subr.bf16.mxu0 %v990_v62  ;;  %v1560_v19 = vld [vmem:[%s1448_s15 + $0x68] sm:$0xff]  ;;  %v555_v20 = vld [vmem:[%s1448_s15 + $0x1e0] sm:$0xff]  ;;  %v1576_v27 = vld [vmem:[%s1448_s15 + $0xf0] sm:$0xff]  ;;  %v327_v28 = vstv %s1519_s6  ;;  %v1028_v29 = vpack.c.bf16 %v1548_v10, %v1545_v9  ;;  %s1737_s6 = sld [smem:[#allocation3 + $0x10]] }
  0x7e   : > { %1021 = vmatpush3.bf16.msra.mxu1 %v1020_v61  ;;  %v556_v21 = vld [vmem:[%s1448_s15 + $0x1e8] sm:$0xff]  ;;  %v1570_v25 = vld [vmem:[%s1448_s15 + $0x160] sm:$0xff]  ;;  %v1000_v31 = vpack.c.bf16 %v1560_v19, %v1556_v15  ;;  %v526_v32 = vld [vmem:[%s1448_s15 + $0xf8] sm:$0xff]  ;;  %v333_v36 = vstv %s1525_s7  ;;  %s1743_s7 = sld [smem:[#allocation3 + $0x11]] }
  0x7f   : > { %1023 = vmatprep.subr.bf16.mxu1 %v1022_v3  ;;  %v1573_v26 = vld [vmem:[%s1448_s15 + $0x168] sm:$0xff]  ;;  %v1585_v33 = vld [vmem:[%s1448_s15 + $0x70] sm:$0xff]  ;;  %v1588_v35 = vld [vmem:[%s1448_s15 + $0x78] sm:$0xff]  ;;  %v1030_v37 = vpack.c.bf16 %v556_v21, %v555_v20  ;;  %v1002_v39 = vpack.c.bf16 %v526_v32, %v1576_v27  ;;  %v339_v44 = vstv %s1531_s29  ;;  %s1746_s29 = sld [smem:[#allocation3 + $0x25]] }
  0x80   : > { %993 = vmatpush3.bf16.msra.mxu0 %v992_v12  ;;  %v1032_v38 = vpack.c.bf16 %v1573_v26, %v1570_v25  ;;  %v557_v41 = vld [vmem:[%s1448_s15 + $0x1f0] sm:$0xff]  ;;  %v558_v42 = vld [vmem:[%s1448_s15 + $0x1f8] sm:$0xff]  ;;  %v1004_v45 = vpack.c.bf16 %v1588_v35, %v1585_v33  ;;  %v343_v50 = vstv %s1541_s27  ;;  %v349_v52 = vstv %s1551_s8  ;;  %s1749_s27 = sld [smem:[#allocation3 + $0x1c]]  ;;  %s1752_s8 = sld [smem:[#allocation3 + $0x12]] }
  0x81   : > { %v1597_v43 = vld [vmem:[%s1448_s15 + $0x170] sm:$0xff]  ;;  %995 = vmatprep.subr.bf16.mxu0 %v994_v18  ;;  %v1034_v47 = vpack.c.bf16 %v558_v42, %v557_v41  ;;  %v1603_v48 = vld [vmem:[%s1448_s15 + $0x178] sm:$0xff]  ;;  %v355_v9 = vstv %s1565_s10  ;;  %s1672_s15 = sld [smem:[#allocation3 + $0xa]]  ;;  %s1754_s10 = sld [smem:[#allocation3 + $0x13]] }
  0x82   : > { %1025 = vmatpush3.bf16.msra.mxu1 %v1024_v17  ;;  %v1606_v49 = vld [vmem:[%s1442_s12] ss:$2 sm:$0xf]  ;;  %v1036_v53 = vpack.c.bf16 %v1603_v48, %v1597_v43  ;;  %v1613_v54 = vld [vmem:[%s1442_s12 + $0x8] ss:$2 sm:$0xf] }
  0x83   : > { %1027 = vmatprep.subr.bf16.mxu1 %v1026_v24  ;;  %v1616_v56 = vld [vmem:[%s1442_s12 + $0x1] ss:$2 sm:$0xf]  ;;  %v274_v57 = vmul.f32 %v273_v40, %v1606_v49  ;;  %v296_v58 = vmul.f32 %v295_v60, %v1606_v49  ;;  %v318_v59 = vmul.f32 %v317_v16, %v1606_v49  ;;  %v1626_v61 = vld [vmem:[%s1442_s12 + $0x9] ss:$2 sm:$0xf]  ;;  %v275_v62 = vmul.f32 %v1613_v54, %v273_v40 }
  0x84   : > { %v278_v63 = vmul.f32 %v1616_v56, %v277_v46  ;;  %v297_v0 = vmul.f32 %v1613_v54, %v295_v60  ;;  %v300_v1 = vmul.f32 %v1616_v56, %v299_v2  ;;  %997 = vmatpush3.bf16.msra.mxu0 %v996_v23  ;;  %v279_v3 = vmul.f32 %v1626_v61, %v277_v46  ;;  %s1650_s12 = sld [smem:[#allocation3 + $0x8]] }
  0x85   : > { %v301_v4 = vmul.f32 %v1626_v61, %v299_v2  ;;  %v319_v40 = vmul.f32 %v1613_v54, %v317_v16  ;;  %v322_v5 = vmul.f32 %v1616_v56, %v321_v22  ;;  %999 = vmatprep.subr.bf16.mxu0 %v998_v30  ;;  %v323_v8 = vmul.f32 %v1626_v61, %v321_v22 }
  0x86   : > { %1029 = vmatpush3.bf16.msra.mxu1 %v1028_v29  ;;  %v280_v6 = vadd.f32 %v278_v63, %v274_v57  ;;  %v302_v60 = vadd.f32 %v300_v1, %v296_v58  ;;  %v281_v46 = vadd.f32 %v279_v3, %v275_v62  ;;  %v340_v12 = vmul.f32 %v339_v44, %v1606_v49 }
  0x87   : > { %1031 = vmatprep.subr.bf16.mxu1 %v1030_v37  ;;  %v303_v2 = vadd.f32 %v301_v4, %v297_v0  ;;  %v324_v10 = vadd.f32 %v322_v5, %v318_v59  ;;  %v325_v15 = vadd.f32 %v323_v8, %v319_v40  ;;  %v341_v16 = vmul.f32 %v1613_v54, %v339_v44 }
  0x88   : > { %v284_v13 = vadd.f32 %v283_v51, %v280_v6  ;;  %v306_v14 = vadd.f32 %v305_v7, %v302_v60  ;;  %1001 = vmatpush3.bf16.msra.mxu0 %v1000_v31  ;;  %v285_v17 = vadd.f32 %v283_v51, %v281_v46  ;;  %v344_v20 = vmul.f32 %v1616_v56, %v343_v50 }
  0x89   : > { %v307_v18 = vadd.f32 %v305_v7, %v303_v2  ;;  %v328_v19 = vadd.f32 %v327_v28, %v324_v10  ;;  %1003 = vmatprep.subr.bf16.mxu0 %v1002_v39  ;;  %v329_v23 = vadd.f32 %v327_v28, %v325_v15  ;;  %v345_v24 = vmul.f32 %v1626_v61, %v343_v50 }
  0x8a   : > { %1033 = vmatpush3.bf16.msra.mxu1 %v1032_v38  ;;  %v286_v21 = vmax.f32 %v284_v13, 0.0  ;;  %v308_v22 = vmax.f32 %v306_v14, 0.0  ;;  %v287_v51 = vmax.f32 %v285_v17, 0.0  ;;  %v346_v26 = vadd.f32 %v344_v20, %v340_v12 }
  0x8b   : > { %1035 = vmatprep.subr.bf16.mxu1 %v1034_v47  ;;  %v309_v7 = vmax.f32 %v307_v18, 0.0  ;;  %v330_v25 = vmax.f32 %v328_v19, 0.0  ;;  %v331_v29 = vmax.f32 %v329_v23, 0.0  ;;  %v347_v30 = vadd.f32 %v345_v24, %v341_v16 }
  0x8c   : > { %v290_v27 = vmul.f32 %v289_v55, %v286_v21  ;;  %v312_v28 = vmul.f32 %v311_v11, %v308_v22  ;;  %1005 = vmatpush3.bf16.msra.mxu0 %v1004_v45  ;;  %v291_v31 = vmul.f32 %v289_v55, %v287_v51  ;;  %v350_v38 = vadd.f32 %v349_v52, %v346_v26 }
  0x8d   : > { %v313_v32 = vmul.f32 %v311_v11, %v309_v7  ;;  %v334_v37 = vmul.f32 %v333_v36, %v330_v25  ;;  %v335_v41 = vmul.f32 %v333_v36, %v331_v29  ;;  %v351_v42 = vadd.f32 %v349_v52, %v347_v30 }
  0x8e   : > { %1037 = vmatpush3.bf16.msra.mxu1 %v1036_v53  ;;  %v292_v39 = vadd.f32 %v290_v27, %v271_v34  ;;  %v361_v33 = vstv %s1650_s12  ;;  %v293_v55 = vadd.f32 %v291_v31, %v271_v34  ;;  %v352_v11 = vmax.f32 %v350_v38, 0.0  ;;  %s1763_s12 = sld [smem:[#allocation3 + $0x26]] }
  0x8f   : > { %v362_v35 = vmul.f32 %v361_v33, %v1606_v49  ;;  %v363_v43 = vmul.f32 %v1613_v54, %v361_v33  ;;  %v353_v45 = vmax.f32 %v351_v42, 0.0  ;;  %v365_v47 = vstv %s1658_s25  ;;  %s1765_s25 = sld [smem:[#allocation3 + $0x1d]] }
  0x90   : > { %v314_v44 = vadd.f32 %v312_v28, %v292_v39  ;;  %v315_v36 = vadd.f32 %v313_v32, %v293_v55  ;;  %v356_v48 = vmul.f32 %v355_v9, %v352_v11  ;;  %v366_v50 = vmul.f32 %v1616_v56, %v365_v47 }
  0x91   : > { %v367_v52 = vmul.f32 %v1626_v61, %v365_v47  ;;  %v357_v34 = vmul.f32 %v355_v9, %v353_v45  ;;  %v371_v57 = vstv %s1670_s26  ;;  %v383_v58 = vstv %s1672_s15  ;;  %s1774_s26 = sld [smem:[#allocation3 + $0x27]] }
  0x92   : > { %v336_v53 = vadd.f32 %v334_v37, %v314_v44  ;;  %v337_v59 = vadd.f32 %v335_v41, %v315_v36  ;;  %v368_v62 = vadd.f32 %v366_v50, %v362_v35  ;;  %v384_v0 = vmul.f32 %v383_v58, %v1606_v49 }
  0x93   : > { %v369_v63 = vadd.f32 %v367_v52, %v363_v43  ;;  %v377_v3 = vstv %s1678_s22  ;;  %v385_v4 = vmul.f32 %v1613_v54, %v383_v58  ;;  %v387_v40 = vstv %s1680_s9 }
  0x94   : > { %v358_v1 = vadd.f32 %v356_v48, %v336_v53  ;;  %v372_v5 = vadd.f32 %v371_v57, %v368_v62  ;;  %v388_v60 = vmul.f32 %v1616_v56, %v387_v40  ;;  %v393_v8 = vstv %s1693_s28 }
  0x95   : > { %v373_v6 = vadd.f32 %v371_v57, %v369_v63  ;;  %v359_v9 = vadd.f32 %v357_v34, %v337_v59  ;;  %v389_v46 = vmul.f32 %v1626_v61, %v387_v40  ;;  %v405_v2 = vstv %s1702_s18 }
  0x96   : > { %v409_v10 = vstv %s1704_s11  ;;  %v374_v12 = vmax.f32 %v372_v5, 0.0  ;;  %v390_v14 = vadd.f32 %v388_v60, %v384_v0  ;;  %v406_v15 = vmul.f32 %v405_v2, %v1606_v49 }
  0x97   : > { %v375_v13 = vmax.f32 %v373_v6, 0.0  ;;  %v391_v16 = vadd.f32 %v389_v46, %v385_v4  ;;  %v407_v17 = vmul.f32 %v1613_v54, %v405_v2  ;;  %v410_v18 = vmul.f32 %v1616_v56, %v409_v10 }
  0x98   : > { %v411_v19 = vmul.f32 %v1626_v61, %v409_v10  ;;  %v378_v20 = vmul.f32 %v377_v3, %v374_v12  ;;  %v394_v22 = vadd.f32 %v393_v8, %v390_v14  ;;  %v415_v23 = vstv %s1713_s21 }
  0x99   : > { %v379_v21 = vmul.f32 %v377_v3, %v375_v13  ;;  %v395_v24 = vadd.f32 %v393_v8, %v391_v16  ;;  %v399_v51 = vstv %s1717_s24  ;;  %v412_v7 = vadd.f32 %v410_v18, %v406_v15 }
  0x9a   : > { %v413_v25 = vadd.f32 %v411_v19, %v407_v17  ;;  %v380_v26 = vadd.f32 %v378_v20, %v358_v1  ;;  %v396_v28 = vmax.f32 %v394_v22, 0.0  ;;  %v427_v29 = vstv %s1720_s30 }
  0x9b   : > { %v381_v27 = vadd.f32 %v379_v21, %v359_v9  ;;  %v397_v30 = vmax.f32 %v395_v24, 0.0  ;;  %v416_v31 = vadd.f32 %v415_v23, %v412_v7  ;;  %v428_v37 = vmul.f32 %v427_v29, %v1606_v49 }
  0x9c   : > { %v417_v32 = vadd.f32 %v415_v23, %v413_v25  ;;  %v400_v38 = vmul.f32 %v399_v51, %v396_v28  ;;  %v421_v39 = vstv %s1727_s5  ;;  %v429_v41 = vmul.f32 %v1613_v54, %v427_v29 }
  0x9d   : > { %v431_v42 = vstv %s1729_s13  ;;  %v401_v33 = vmul.f32 %v399_v51, %v397_v30  ;;  %v418_v55 = vmax.f32 %v416_v31, 0.0  ;;  %v437_v45 = vstv %s1735_s14 }
  0x9e   : > { %v419_v11 = vmax.f32 %v417_v32, 0.0  ;;  %v432_v35 = vmul.f32 %v1616_v56, %v431_v42  ;;  %v402_v43 = vadd.f32 %v400_v38, %v380_v26  ;;  %v433_v44 = vmul.f32 %v1626_v61, %v431_v42 }
  0x9f   : > { %v449_v47 = vstv %s1737_s6  ;;  %v403_v36 = vadd.f32 %v401_v33, %v381_v27  ;;  %v422_v48 = vmul.f32 %v421_v39, %v418_v55  ;;  %v453_v58 = vstv %s1743_s7 }
  0xa0   : > { %v423_v50 = vmul.f32 %v421_v39, %v419_v11  ;;  %v434_v52 = vadd.f32 %v432_v35, %v428_v37  ;;  %v435_v53 = vadd.f32 %v433_v44, %v429_v41  ;;  %v450_v34 = vmul.f32 %v449_v47, %v1606_v49 }
  0xa1   : > { %v451_v57 = vmul.f32 %v1613_v54, %v449_v47  ;;  %v424_v59 = vadd.f32 %v422_v48, %v402_v43  ;;  %v443_v63 = vstv %s1746_s29  ;;  %v454_v0 = vmul.f32 %v1616_v56, %v453_v58 }
  0xa2   : > { %v438_v62 = vadd.f32 %v437_v45, %v434_v52  ;;  %v425_v1 = vadd.f32 %v423_v50, %v403_v36  ;;  %v439_v3 = vadd.f32 %v437_v45, %v435_v53  ;;  %v455_v4 = vmul.f32 %v1626_v61, %v453_v58 }
  0xa3   : > { %v459_v40 = vstv %s1749_s27  ;;  %v456_v6 = vadd.f32 %v454_v0, %v450_v34  ;;  %v471_v60 = vstv %s1752_s8  ;;  %v475_v8 = vstv %s1754_s10 }
  0xa4   : > { %v440_v5 = vmax.f32 %v438_v62, 0.0  ;;  %v441_v9 = vmax.f32 %v439_v3, 0.0  ;;  %v457_v46 = vadd.f32 %v455_v4, %v451_v57  ;;  %v472_v2 = vmul.f32 %v471_v60, %v1606_v49 }
  0xa5   : > { %v473_v10 = vmul.f32 %v1613_v54, %v471_v60  ;;  %v460_v13 = vadd.f32 %v459_v40, %v456_v6  ;;  %v476_v14 = vmul.f32 %v1616_v56, %v475_v8  ;;  %v477_v15 = vmul.f32 %v1626_v61, %v475_v8 }
  0xa6   : > { %v444_v12 = vmul.f32 %v443_v63, %v440_v5  ;;  %v445_v16 = vmul.f32 %v443_v63, %v441_v9  ;;  %v461_v17 = vadd.f32 %v459_v40, %v457_v46  ;;  %v465_v18 = vstv %s1763_s12 }
  0xa7   : > { %v481_v19 = vstv %s1765_s25  ;;  %v462_v21 = vmax.f32 %v460_v13, 0.0  ;;  %v478_v22 = vadd.f32 %v476_v14, %v472_v2  ;;  %v479_v23 = vadd.f32 %v477_v15, %v473_v10 }
  0xa8   : > { %v446_v20 = vadd.f32 %v444_v12, %v424_v59  ;;  %v447_v24 = vadd.f32 %v445_v16, %v425_v1  ;;  %v463_v51 = vmax.f32 %v461_v17, 0.0  ;;  %v565_v49 = vlaneseq  ;;  %v494_v59 = vld [vmem:[#allocation2] sm:$0x3] }
  0xa9   : > { %v466_v7 = vmul.f32 %v465_v18, %v462_v21  ;;  %v482_v54 = vadd.f32 %v481_v19, %v478_v22  ;;  %v483_v25 = vadd.f32 %v481_v19, %v479_v23  ;;  %v1259_v26 = vmov 1966171168   ;;  %v897_v1 = vld [vmem:[%s1828_s3] ss:$0 sm:$0xff] (!%p896_p13) }
  0xaa   : > { %v563_v27 = vunpack.c.l.s4 %v1259_v26  ;;  %v467_v56 = vmul.f32 %v465_v18, %v463_v51  ;;  %v487_v28 = vstv %s1774_s26  ;;  %v566_v39 = vshrl.u32 %v565_v49, 7 }
  0xab   : > { %v468_v61 = vadd.f32 %v466_v7, %v446_v20  ;;  %v484_v29 = vmax.f32 %v482_v54, 0.0  ;;  %v485_v30 = vmax.f32 %v483_v25, 0.0 }
  0xac   : > { %v469_v31 = vadd.f32 %v467_v56, %v447_v24  ;;  %v564_v38 = vunpack.c.0.s8 %v563_v27 }
  0xad   : > { %v488_v32 = vmul.f32 %v487_v28, %v484_v29  ;;  %v489_v37 = vmul.f32 %v487_v28, %v485_v30 }
  0xae   : > { %v567_v11 = vsub.s32 %v564_v38, %v566_v39 }
  0xaf   : > { %v490_v41 = vadd.f32 %v488_v32, %v468_v61  ;;  %v491_v42 = vadd.f32 %v489_v37, %v469_v31 }
  0xb1   : > { %v492_v33 = vmax.f32 %v490_v41, 0.0  ;;  %v493_v55 = vmax.f32 %v491_v42, 0.0 }
  0xb3   : > { %v561_v35 = vcombine.low %v492_v33, %v493_v55 }
  0xb5   : > { %v568_v43 = vrot.slane %v561_v35, %v567_v11 }
  0xb7   : > { %v569_v44 = vcombine.high %v568_v43, %v568_v43  ;;  %v576_v45 = vrot.slane %v568_v43, %v567_v11 }
  0xb9   : > { %v583_v47 = vrot.slane %v569_v44, %v567_v11  ;;  %v584_v36 = vcombine.high %v576_v45, %v576_v45 }
  0xbb   : > { %654 = vmatprep.mubr.f32.mxu0 %v583_v47  ;;  %v585_v48 = vcombine.high %v583_v47, %v583_v47 }
  0xbc   : > { %655 = vmatmul.mubr.f32.vlgmr.msra.gmra.mrb[0].mxu0 %v576_v45 }
  0xbd   : > { %724 = vmatprep.mubr.f32.mxu1 %v585_v48 }
  0xbe   : > { %725 = vmatmul.mubr.f32.vlgmr.msra.gmra.mrb[0].mxu1 %v584_v36 }
 0x18f   : > { %v936_v50 = vpop.f32.mrb[0].mxu0 }
 0x190   : > { %v937_v52 = vpop.f32.mrb[1].mxu0 }
 0x191   : > { %v938_v53 = vadd.f32 %v937_v52, %v936_v50  ;;  %v971_v34 = vpop.f32.mrb[0].mxu1 }
 0x192   : > { %v972_v57 = vpop.f32.mrb[1].mxu1 }
 0x193   : > { %v973_v58 = vadd.f32 %v972_v57, %v971_v34  ;;  %735 = sbr.rel (%p896_p13) target bundleno = 420 (0x1a4), region = 56 }
 0x195   : > { %v727_v62 = vadd.f32 %v973_v58, %v938_v53 }
 0x197   : > { %v730_v63 = vadd.f32 %v727_v62, %v494_v59 }
 0x199   : > { %731 = vst [vmem:[#allocation2] sm:$0x3] %v730_v63 }
 0x1a0   : > { %v736_v0 = vld [vmem:[#allocation2] sm:$0x3] }
 0x1a1   : > { %v744_v3 = vadd.f32 %v897_v1, %v736_v0 }
 0x1a3   : > { %745 = vst [vmem:[#allocation10] sm:$0x3] %v744_v3 }
 0x1a4 PF: > { %p1064_p0 = scmp.eq.s32.totalorder %s1305_s19, 3  ;;  %s1260_s9 = smov [#allocation10]  }
 0x1a5   : > { %s753_s28 = sshll.u32 %s1260_s9, 4  ;;  %s754_s28 = int_to_ptr.vmem [resolvable:$true] %s753_s28 }
 0x1a6   : > { %s1178_s18 = scalar_lea.vmem %s754_s28, 32  ;;  %p1185_p5 = scmp.lt.s32.totalorder %s754_s28, %s754_s28 }
 0x1a7   : > { %p1179_p2 = scmp.ne.s32.totalorder %s754_s28, %s1178_s18  ;;  %p1186_p8 = scmp.lt.s32.totalorder %s1178_s18, %s1178_s18 }
 0x1a9   : > { %p1180_p3 = pnand %p1179_p2, %p1064_p0  ;;  %p1187_p1 = por %p1186_p8, %p1185_p5 }
 0x1ab   : > { %p1181_p6 = pneg %p1180_p3 }
 0x1ad   : > { %p1188_p4 = pnand %p1187_p1, %p1181_p6 }
 0x1af   : > { %1191 = shalt.err (!%p1188_p4)
}
 0x1b0   : > { %s1192_s24 = scalar_lea.hbm %s1829_s4, 32 }
 0x1b1   : > { %p1193_p7 = scmp.ne.s32.totalorder %s1829_s4, %s1192_s24  ;;  %p1198_p11 = scmp.lt.u32.totalorder %s1192_s24, %s1829_s4 }
 0x1b3   : > { %p1194_p12 = pnand %p1193_p7, %p1064_p0 }
 0x1b5   : > { %p1195_p9 = pneg %p1194_p12 }
 0x1b7   : > { %p1200_p10 = pnand %p1198_p11, %p1195_p9 }
 0x1b9   : > { %1203 = shalt.err (!%p1200_p10)
}
 0x1ba   : > { %1047 = dma.vmem_to_hbm [thread:$0]  (%p1064_p0), %s754_s28, 32, %s1829_s4, [#allocation5]  }
 0x1bb   : > { %1233 = dma.done.wait (%p1064_p0), [#allocation5], 32  }
 0x1bc   : > { %1235 = vsyncadd (%p1064_p0), [#allocation5], 4294967264 }
 0x1bd PF: > { %p19_p13 = scmp.ge.s32.totalorder %s1308_s20, 6   ;;  %s1839_s15 = smov %s1242_s16 }
 0x1be   : > { %s1840_s16 = smov %s1246_s17  ;;  %s1841_s17 = smov %s1318_s23 }
 0x1bf   : > { %s1842_s18 = smov %s1308_s20  ;;  %21 = sbr.rel (!%p19_p13) target bundleno = 7 (0x7), region = 102 }
 0x1c6   :  { %766 = vsyncpa [#allocation4], 1 }
 0x1c7   :  { %768 = vsyncpa [#allocation4 + $0x1], 1 }
 0x1c8   :  { %769 = vsyncpa [#allocation9], 1 }
 0x1c9   :  { %771 = vsyncpa [#allocation9 + $0x1], 1 }
 0x1ca   :  { %772 = vsyncpa [#allocation5], 1 }
 0x1cb   :  { %774 = vsyncpa [#allocation5 + $0x1], 1 }
 0x1cc   :  { %775 = vsyncpa [#allocation6], 1 }
 0x1cd   :  { %777 = vsyncpa [#allocation6 + $0x1], 1 }

</bundles_post_ra>
